<compile_context>
chip_gen: v7x
topology: tpu7x:2x2x1
jax: 0.10.0
libtpu: 0.0.40
codegen_flags: <defaults>
</compile_context>

<pallas_src>
import functools

import jax
import jax.numpy as jnp
from jax import lax
from jax.experimental import pallas as pl
from jax.experimental.pallas import tpu as pltpu

LANES = 128
MAX_ROWS_PER_TILE = 2048  # (2048, 128) f32 block = 1 MiB per input per step


def _cdiv(a, b):
    return -(-a // b)


def _round_up(x, m):
    return _cdiv(x, m) * m


def _charbonnier_partial_kernel(pred_ref, tgt_ref, acc_ref, *, eps, n_valid,
                                rows_per_tile, blocks_per_split, needs_mask):
    """Accumulate sqrt((pred-target)^2 + eps) into a block-shaped VMEM acc."""
    c = pl.program_id(0)   # parallel split (TensorCore) axis
    i = pl.program_id(1)   # reduction (arbitrary) axis

    @pl.when(i == 0)
    def _():
        acc_ref[...] = jnp.zeros_like(acc_ref)

    p = pred_ref[...].astype(jnp.float32)
    t = tgt_ref[...].astype(jnp.float32)
    d = p - t
    v = jnp.sqrt(d * d + jnp.float32(eps))

    if needs_mask:
        # Mask every element whose *intended* flat index is >= n_valid. This
        # covers: tail of a partial last block, any 128-pad elements, and
        # whole blocks re-read due to index-map clamping on an uneven split.
        # (int32 flat index: fine for tensors < 2^31 elements.)
        blk = c * blocks_per_split + i
        row0 = blk * rows_per_tile
        row_ids = row0 + lax.broadcasted_iota(jnp.int32, v.shape, 0)
        col_ids = lax.broadcasted_iota(jnp.int32, v.shape, 1)
        flat_idx = row_ids * LANES + col_ids
        v = jnp.where(flat_idx < n_valid, v, jnp.float32(0.0))

    acc_ref[...] += v  # pure VPU adds; stays hidden under the HBM DMA


def charbonnier_loss_pallas(pred, target, loss_weight=1.0, reduction="mean",
                            eps=1e-12):
    """JAX/Pallas equivalent of CharbonnierLoss.forward (weight=None)."""
    assert pred.shape == target.shape
    n = pred.size

    # Flatten NCHW -> 1D. Pure reshape of a contiguous array: no data movement.
    flat_p = jnp.reshape(pred, (-1,))
    flat_t = jnp.reshape(target, (-1,))

    if n % LANES != 0:
        # TODO(synk): this rare unaligned case pays one small pad copy; the
        # padded zeros are exactly masked out inside the kernel.
        pad = _round_up(n, LANES) - n
        flat_p = jnp.pad(flat_p, (0, pad))
        flat_t = jnp.pad(flat_t, (0, pad))

    rows = flat_p.size // LANES
    p2d = flat_p.reshape(rows, LANES)
    t2d = flat_t.reshape(rows, LANES)

    # Tile sizing: as large as possible up to 1 MiB blocks; multiple of 16 so
    # bf16 inputs also satisfy the minimum tile constraint.
    rows_per_tile = min(MAX_ROWS_PER_TILE, _round_up(rows, 16))
    total_blocks = _cdiv(rows, rows_per_tile)
    num_splits = 2 if total_blocks >= 2 else 1       # v7x dual-TC split
    blocks_per_split = _cdiv(total_blocks, num_splits)
    # Masking is needed whenever the grid's intended coverage exceeds n.
    needs_mask = (num_splits * blocks_per_split * rows_per_tile * LANES) != n

    kernel = functools.partial(
        _charbonnier_partial_kernel,
        eps=float(eps), n_valid=n, rows_per_tile=rows_per_tile,
        blocks_per_split=blocks_per_split, needs_mask=needs_mask)

    def in_map(c, i):
        blk = c * blocks_per_split + i
        # Clamp so we never issue a DMA for a block fully past the array end
        # (its contribution is zeroed by the in-kernel mask anyway).
        return (jnp.minimum(blk, total_blocks - 1), 0)

    partials = pl.pallas_call(
        kernel,
        out_shape=jax.ShapeDtypeStruct((num_splits, rows_per_tile, LANES),
                                       jnp.float32),
        grid=(num_splits, blocks_per_split),
        in_specs=[
            pl.BlockSpec((rows_per_tile, LANES), in_map),
            pl.BlockSpec((rows_per_tile, LANES), in_map),
        ],
        # Output block is the per-split accumulator: same block across the
        # reduction axis -> resident in VMEM, written back once per split.
        out_specs=pl.BlockSpec((None, rows_per_tile, LANES),
                               lambda c, i: (c, 0, 0)),
        compiler_params=pltpu.CompilerParams(
            dimension_semantics=("parallel", "arbitrary")),
    )(p2d, t2d)

    total = jnp.sum(partials)  # tiny final reduction in plain JAX

    if reduction == "mean":
        loss = total / jnp.float32(n)
    elif reduction == "sum":
        loss = total
    else:
        # TODO(synk): reduction='none' (elementwise map) and the optional
        # element-wise `weight` tensor of the weighted_loss decorator are not
        # implemented in this reduction kernel.
        raise ValueError("only 'mean'/'sum' reductions implemented in kernel")
    return jnp.float32(loss_weight) * loss


def charbonnier_loss_ref(pred, target, loss_weight=1.0, eps=1e-12):
    d = pred.astype(jnp.float32) - target.astype(jnp.float32)
    return loss_weight * jnp.mean(jnp.sqrt(d * d + eps))


if __name__ == "__main__":
    key = jax.random.PRNGKey(0)
    k1, k2, k3, k4 = jax.random.split(key, 4)

    # Small NCHW shapes consistent with the module's forward.
    pred = jax.random.normal(k1, (2, 4, 16, 16), dtype=jnp.float32)
    target = jax.random.normal(k2, (2, 4, 16, 16), dtype=jnp.float32)
    out = charbonnier_loss_pallas(pred, target, loss_weight=1.0,
                                  reduction="mean", eps=1e-12)
    out = jax.block_until_ready(out)
    ref = charbonnier_loss_ref(pred, target)
    assert jnp.allclose(out, ref, rtol=1e-5, atol=1e-6), (out, ref)

    # Second case: exercises the 128-unaligned pad path, the partial-block
    # mask, and the 2-way (parallel) split.
    pred2 = jax.random.normal(k3, (2, 8, 130, 130), dtype=jnp.float32)
    target2 = jax.random.normal(k4, (2, 8, 130, 130), dtype=jnp.float32)
    out2 = charbonnier_loss_pallas(pred2, target2, loss_weight=0.5,
                                   reduction="mean", eps=1e-12)
    out2 = jax.block_until_ready(out2)
    ref2 = charbonnier_loss_ref(pred2, target2, loss_weight=0.5)
    assert jnp.allclose(out2, ref2, rtol=1e-5, atol=1e-6), (out2, ref2)

    print("KERNEL_OK")
</pallas_src>

<mosaic_0001>
module attributes {stable_mosaic.version = 11 : i64} {
  func.func @_charbonnier_partial_kernel(%arg0: i32, %arg1: i32, %arg2: memref<16x128xf32, #tpu.memory_space<vmem>>, %arg3: memref<16x128xf32, #tpu.memory_space<vmem>>, %arg4: memref<1x16x128xf32, #tpu.memory_space<vmem>>) attributes {dimension_semantics = [#tpu.dimension_semantics<parallel>, #tpu.dimension_semantics<arbitrary>], iteration_bounds = array<i64: 1, 1>, scalar_prefetch = 0 : i64, scratch_operands = 0 : i64, tpu.core_type = #tpu.core_type<tc>, window_params = [{transform_indices = @transform_0, window_bounds = array<i64: 16, 128>}, {transform_indices = @transform_1, window_bounds = array<i64: 16, 128>}, {transform_indices = @transform_2, window_bounds = array<i64: 1, 16, 128>}]} {
    %c0_i32 = arith.constant 0 : i32
    %0 = arith.cmpi eq, %arg1, %c0_i32 : i32
    %1 = arith.extui %0 : i1 to i32
    %c0_i32_0 = arith.constant 0 : i32
    %2 = arith.cmpi ne, %1, %c0_i32_0 : i32
    scf.if %2 {
      %cst_10 = arith.constant 0.000000e+00 : f32
      %16 = vector.broadcast %cst_10 : f32 to vector<16x128xf32>
      %c0_11 = arith.constant 0 : index
      %c0_12 = arith.constant 0 : index
      %c0_13 = arith.constant 0 : index
      %17 = vector.load %arg4[%c0_11, %c0_12, %c0_13] : memref<1x16x128xf32, #tpu.memory_space<vmem>>, vector<1x16x128xf32>
      %18 = vector.shape_cast %17 : vector<1x16x128xf32> to vector<16x128xf32>
      %19 = vector.shape_cast %16 : vector<16x128xf32> to vector<1x16x128xf32>
      tpu.vector_store %arg4[%c0_11, %c0_12, %c0_13], %19 {strides = array<i32>} : memref<1x16x128xf32, #tpu.memory_space<vmem>>, vector<1x16x128xf32>,
    } else {
    }
    %c0 = arith.constant 0 : index
    %c0_1 = arith.constant 0 : index
    %3 = vector.load %arg2[%c0, %c0_1] : memref<16x128xf32, #tpu.memory_space<vmem>>, vector<16x128xf32>
    %c0_2 = arith.constant 0 : index
    %c0_3 = arith.constant 0 : index
    %4 = vector.load %arg3[%c0_2, %c0_3] : memref<16x128xf32, #tpu.memory_space<vmem>>, vector<16x128xf32>
    %5 = arith.subf %3, %4 : vector<16x128xf32>
    %6 = arith.mulf %5, %5 : vector<16x128xf32>
    %cst = arith.constant 9.99999996E-13 : f32
    %7 = vector.broadcast %cst : f32 to vector<16x128xf32>
    %8 = arith.addf %6, %7 : vector<16x128xf32>
    %9 = math.sqrt %8 : vector<16x128xf32>
    %c0_4 = arith.constant 0 : index
    %c0_5 = arith.constant 0 : index
    %c0_6 = arith.constant 0 : index
    %10 = vector.load %arg4[%c0_4, %c0_5, %c0_6] : memref<1x16x128xf32, #tpu.memory_space<vmem>>, vector<1x16x128xf32>
    %11 = vector.shape_cast %10 : vector<1x16x128xf32> to vector<16x128xf32>
    %12 = arith.addf %11, %9 : vector<16x128xf32>
    %c0_7 = arith.constant 0 : index
    %c0_8 = arith.constant 0 : index
    %c0_9 = arith.constant 0 : index
    %13 = vector.load %arg4[%c0_7, %c0_8, %c0_9] : memref<1x16x128xf32, #tpu.memory_space<vmem>>, vector<1x16x128xf32>
    %14 = vector.shape_cast %13 : vector<1x16x128xf32> to vector<16x128xf32>
    %15 = vector.shape_cast %12 : vector<16x128xf32> to vector<1x16x128xf32>
    tpu.vector_store %arg4[%c0_7, %c0_8, %c0_9], %15 {strides = array<i32>} : memref<1x16x128xf32, #tpu.memory_space<vmem>>, vector<1x16x128xf32>,
    return
  }
  func.func @transform_0(%arg0: i32, %arg1: i32) -> (i32, i32) {
    %c1_i32 = arith.constant 1 : i32
    %0 = arith.muli %arg0, %c1_i32 : i32
    %1 = arith.addi %0, %arg1 : i32
    %c0_i32 = arith.constant 0 : i32
    %2 = arith.minsi %1, %c0_i32 : i32
    %c0_i32_0 = arith.constant 0 : i32
    %c0_i32_1 = arith.constant 0 : i32
    return %2, %c0_i32_0 : i32, i32
  }
  func.func @transform_1(%arg0: i32, %arg1: i32) -> (i32, i32) {
    %c1_i32 = arith.constant 1 : i32
    %0 = arith.muli %arg0, %c1_i32 : i32
    %1 = arith.addi %0, %arg1 : i32
    %c0_i32 = arith.constant 0 : i32
    %2 = arith.minsi %1, %c0_i32 : i32
    %c0_i32_0 = arith.constant 0 : i32
    %c0_i32_1 = arith.constant 0 : i32
    return %2, %c0_i32_0 : i32, i32
  }
  func.func @transform_2(%arg0: i32, %arg1: i32) -> (i32, i32, i32) {
    %c0_i32 = arith.constant 0 : i32
    %c0_i32_0 = arith.constant 0 : i32
    %c0_i32_1 = arith.constant 0 : i32
    return %arg0, %c0_i32, %c0_i32_0 : i32, i32, i32
  }
}

</mosaic_0001>

<bundles_post_ra>
// kernel: tpu_custom_call.1
= control target key start
LH: loop header
LB: loop body
LE: loop exit
PB: predicated region body
PF: predicated region fallthrough
CT: control target
= control target key end

     0   :  { %7 = vsyncpa [#allocation3], 0  ;;  %s265_s0 = inlined_call_operand.hbm [shape: f32[16,128], index: 0, kind: input, shape index: {}]   ;;  %s266_s1 = inlined_call_operand.hbm [shape: f32[16,128], index: 1, kind: input, shape index: {}]   ;;  %s267_s2 = inlined_call_operand.hbm [shape: f32[1,16,128], index: 2, kind: output, shape index: {}]  }
   0x1   :  { %8 = vsyncpa [#allocation6], 0 }
   0x2   :  { %9 = vsyncpa [#allocation4], 0  ;;  %s200_s9 = smov [#allocation2]   ;;  %s128_s13 = scalar_lea.hbm %s265_s0, 256 }
   0x3   :  { %s21_s10 = sshll.u32 %s200_s9, 4  ;;  %p129_p0 = scmp.ne.s32.totalorder %s265_s0, %s128_s13  ;;  %s22_s10 = int_to_ptr.vmem [resolvable:$true] %s21_s10 }
   0x4   :  { %p132_p1 = scmp.lt.u32.totalorder %s128_s13, %s265_s0 }
   0x6   :  { %p134_p2 = pnand %p132_p1, %p129_p0 }
   0x8   :  { %137 = shalt.err (!%p134_p2)
}
   0x9   :  { %s138_s18 = scalar_lea.vmem %s22_s10, 256  ;;  %p143_p4 = scmp.lt.s32.totalorder %s22_s10, %s22_s10 }
   0xa   :  { %p139_p3 = scmp.ne.s32.totalorder %s22_s10, %s138_s18  ;;  %p144_p5 = scmp.lt.s32.totalorder %s138_s18, %s138_s18 }
   0xc   :  { %p145_p6 = por %p144_p5, %p143_p4 }
   0xe   :  { %p146_p7 = pnand %p145_p6, %p139_p3 }
  0x10   :  { %149 = shalt.err (!%p146_p7)
}
  0x11   :  { %s201_s19 = smov 128   ;;  %s202_s20 = smov 8  }
  0x12   :  { %27 = dma.hbm_to_vmem [thread:$0]  %s265_s0, 256, %s22_s10, [#allocation3], %s201_s19, %s201_s19, %s202_s20  }
  0x13   :  { %s203_s23 = smov [#allocation5]   ;;  %s150_s27 = scalar_lea.hbm %s266_s1, 256 }
  0x14   :  { %s39_s24 = sshll.u32 %s203_s23, 4  ;;  %p151_p8 = scmp.ne.s32.totalorder %s266_s1, %s150_s27  ;;  %s40_s24 = int_to_ptr.vmem [resolvable:$true] %s39_s24 }
  0x15   :  { %p154_p9 = scmp.lt.u32.totalorder %s150_s27, %s266_s1 }
  0x17   :  { %p156_p10 = pnand %p154_p9, %p151_p8 }
  0x19   :  { %159 = shalt.err (!%p156_p10)
}
  0x1a   :  { %s160_s4 = scalar_lea.vmem %s40_s24, 256  ;;  %p165_p12 = scmp.lt.s32.totalorder %s40_s24, %s40_s24 }
  0x1b   :  { %p161_p11 = scmp.ne.s32.totalorder %s40_s24, %s160_s4  ;;  %p166_p13 = scmp.lt.s32.totalorder %s160_s4, %s160_s4 }
  0x1d   :  { %p167_p0 = por %p166_p13, %p165_p12 }
  0x1f   :  { %p168_p1 = pnand %p167_p0, %p161_p11 }
  0x21   :  { %171 = shalt.err (!%p168_p1)
}
  0x22   :  { %45 = dma.hbm_to_vmem [thread:$0]  %s266_s1, 256, %s40_s24, [#allocation6], %s201_s19, %s201_s19, %s202_s20  }
  0x23   :  { %194 = dma.done.wait [#allocation3], 256  }
  0x24   :  { %195 = vsyncadd [#allocation3], 4294967040 }
  0x25   :  { %196 = dma.done.wait [#allocation6], 256  }
  0x26   :  { %197 = vsyncadd [#allocation6], 4294967040  ;;  %v66_v0 = vld [vmem:[#allocation2] sm:$0xff]  ;;  %v68_v1 = vld [vmem:[#allocation5] sm:$0xff]  ;;  %s204_s1 = smov [#allocation7]  }
  0x27   :  { %v67_v2 = vld [vmem:[#allocation2 + $0x8] sm:$0xff]  ;;  %v70_v3 = vsub.f32 %v66_v0, %v68_v1  ;;  %v69_v4 = vld [vmem:[#allocation5 + $0x8] sm:$0xff]  ;;  %s101_s6 = sshll.u32 %s204_s1, 4  ;;  %s102_s6 = int_to_ptr.vmem [resolvable:$true] %s101_s6 }
  0x28   :  { %v71_v5 = vsub.f32 %v67_v2, %v69_v4  ;;  %s172_s7 = scalar_lea.vmem %s102_s6, 256  ;;  %p177_p3 = scmp.lt.s32.totalorder %s102_s6, %s102_s6 }
  0x29   :  { %v72_v6 = vmul.f32 %v70_v3, %v70_v3  ;;  %p173_p2 = scmp.ne.s32.totalorder %s102_s6, %s172_s7  ;;  %p178_p4 = scmp.lt.s32.totalorder %s172_s7, %s172_s7 }
  0x2a   :  { %v73_v7 = vmul.f32 %v71_v5, %v71_v5 }
  0x2b   :  { %v74_v8 = vadd.f32 1e-12, %v72_v6  ;;  %p179_p5 = por %p178_p4, %p177_p3 }
  0x2c   :  { %v75_v9 = vadd.f32 1e-12, %v73_v7 }
  0x2d   :  { %124 = vrsqrt.f32 %v74_v8  ;;  %vm78_vm0 = vcmp.eq.f32.partialorder %v74_v8, inf  ;;  %v81_v11 = vand.u32 2147483648, %v74_v8  ;;  %vm80_vm1 = vcmp.eq.f32.partialorder %v74_v8, 0.0  ;;  %p180_p6 = pnand %p179_p5, %p173_p2 }
  0x2e   :  { %126 = vrsqrt.f32 %v75_v9  ;;  %vm85_vm2 = vcmp.eq.f32.partialorder %v75_v9, inf  ;;  %v88_v14 = vand.u32 2147483648, %v75_v9  ;;  %vm87_vm3 = vcmp.eq.f32.partialorder %v75_v9, 0.0 }
  0x37   :  { %v125_v10 = vpop.eup %124 }
  0x38   :  { %v127_v12 = vpop.eup %126  ;;  %v77_v13 = vmul.f32 %v125_v10, %v74_v8 }
  0x39   :  { %v84_v15 = vmul.f32 %v127_v12, %v75_v9 }
  0x3a   :  { %v79_v16 = vsel %vm78_vm0, %v74_v8, %v77_v13 }
  0x3b   :  { %v82_v17 = vsel %vm80_vm1, %v81_v11, %v79_v16  ;;  %v86_v18 = vsel %vm85_vm2, %v75_v9, %v84_v15 }
  0x3c   :  { %v89_v19 = vsel %vm87_vm3, %v88_v14, %v86_v18  ;;  %94 = vst [vmem:[#allocation7] sm:$0xff] %v82_v17 }
  0x3d   :  { %95 = vst [vmem:[#allocation7 + $0x8] sm:$0xff] %v89_v19 }
  0x3e   :  { %183 = shalt.err (!%p180_p6)
}
  0x3f   :  { %s184_s10 = scalar_lea.hbm %s267_s2, 256 }
  0x40   :  { %p185_p7 = scmp.ne.s32.totalorder %s267_s2, %s184_s10  ;;  %p188_p8 = scmp.lt.u32.totalorder %s184_s10, %s267_s2 }
  0x42   :  { %p190_p9 = pnand %p188_p8, %p185_p7 }
  0x44   :  { %193 = shalt.err (!%p190_p9)
}
  0x45   :  { %107 = dma.vmem_to_hbm [thread:$0]  %s102_s6, 256, %s267_s2, [#allocation4], %s201_s19, %s201_s19, %s202_s20  }
  0x46   :  { %198 = dma.done.wait [#allocation4], 256  }
  0x47   :  { %199 = vsyncadd [#allocation4], 4294967040 }
  0x48   :  { %111 = vsyncpa [#allocation3], 1 }
  0x49   :  { %112 = vsyncpa [#allocation6], 1 }
  0x4a   :  { %113 = vsyncpa [#allocation4], 1 }

</bundles_post_ra>
